<compile_context>
chip_gen: v5e
topology: v5e:2x2
jax: 0.10.0
libtpu: 0.0.40
codegen_flags: <defaults>
</compile_context>

<pallas_src>
import functools

import jax
import jax.numpy as jnp
from jax.experimental import pallas as pl
from jax.experimental.pallas import tpu as pltpu


_SMALL_C_THRESHOLD = 32


def _torgb_kernel_small_c(x_ref, w_ref, b_ref, o_ref):
    """VPU path (C <= 32): weights/bias are SMEM scalars.

    x_ref: VMEM (1, C, T)   w_ref: SMEM (3, C)   b_ref: SMEM (3,)
    o_ref: VMEM (1, 3, T)
    """
    C = x_ref.shape[1]
    x = x_ref[0].astype(jnp.float32)              # (C, T), lane-dense load
    rows = []
    for o in range(3):                            # static unroll over 3 RGB rows
        acc = w_ref[o, 0] * x[0:1, :]             # scalar * (1, T) broadcast (VPU)
        for c in range(1, C):
            acc = acc + w_ref[o, c] * x[c:c + 1, :]
        acc = acc + b_ref[o]
        rows.append(jnp.tanh(acc))                # EUP
    o_ref[0] = jnp.concatenate(rows, axis=0).astype(o_ref.dtype)  # (3, T) lane-dense store


def _torgb_kernel_large_c(x_ref, w_ref, b_ref, o_ref):
    """MXU path (C > 32).

    x_ref: VMEM (1, C, T)   w_ref: VMEM (3, C)   b_ref: VMEM (3, 1)
    o_ref: VMEM (1, 3, T)
    """
    acc = jnp.dot(w_ref[...], x_ref[0].astype(jnp.float32),
                  preferred_element_type=jnp.float32)             # (3, T)
    acc = acc + b_ref[...]                                        # (3, 1) lane-broadcast
    o_ref[0] = jnp.tanh(acc).astype(o_ref.dtype)


@functools.partial(jax.jit,
                   static_argnames=("max_tile_pix", "tile_vmem_budget_bytes"))
def to_rgb_forward(x_nchw, weight, bias, *,
                   max_tile_pix=8192,
                   tile_vmem_budget_bytes=32 * 1024 * 1024):
    """x_nchw: (N, C, H, W); weight: (3, C) (PyTorch conv weight squeezed);
    bias: (3,). Returns (N, 3, H, W) = tanh(conv1x1(x))."""
    N, C, H, W = x_nchw.shape
    P = H * W
    itemsize = jnp.dtype(x_nchw.dtype).itemsize

    # --- pick a lane-dense pixel tile (multiple of 128, as big as the VMEM
    #     budget allows: 2x double-buffered input + 2x output per pixel). -----
    bytes_per_pix = 2 * (C + 3) * itemsize
    tile_pix = min(max_tile_pix, max(1, tile_vmem_budget_bytes // bytes_per_pix))
    tile_pix = max(128, (tile_pix // 128) * 128)
    tile_pix = min(tile_pix, pl.cdiv(P, 128) * 128)   # no bigger than the (padded) data

    grid_p = pl.cdiv(P, tile_pix)
    P_pad = grid_p * tile_pix

    x = x_nchw.reshape(N, C, P)
    if P_pad != P:
        x = jnp.pad(x, ((0, 0), (0, 0), (0, P_pad - P)))

    # --- operand layout per C regime ----------------------------------------
    if C > _SMALL_C_THRESHOLD:
        kernel = _torgb_kernel_large_c
        w_arg = weight.astype(jnp.float32)                 # (3, C) in VMEM
        b_arg = bias.reshape(3, 1).astype(jnp.float32)     # (3, 1) in VMEM
        w_spec = pl.BlockSpec((3, C), lambda n, p: (0, 0))
        b_spec = pl.BlockSpec((3, 1), lambda n, p: (0, 0))
    else:
        kernel = _torgb_kernel_small_c
        w_arg = weight.astype(jnp.float32)                 # (3, C) scalars in SMEM
        b_arg = bias.astype(jnp.float32)                   # (3,)   scalars in SMEM
        w_spec = pl.BlockSpec(memory_space=pltpu.MemorySpace.SMEM)
        b_spec = pl.BlockSpec(memory_space=pltpu.MemorySpace.SMEM)

    out = pl.pallas_call(
        kernel,
        out_shape=jax.ShapeDtypeStruct((N, 3, P_pad), x_nchw.dtype),
        grid_spec=pltpu.PrefetchScalarGridSpec(
            num_scalar_prefetch=0,
            grid=(N, grid_p),
            in_specs=[
                pl.BlockSpec((1, C, tile_pix), lambda n, p: (n, 0, p)),
                w_spec,
                b_spec,
            ],
            out_specs=pl.BlockSpec((1, 3, tile_pix), lambda n, p: (n, 0, p)),
        ),
        compiler_params=pltpu.CompilerParams(
            dimension_semantics=("parallel", "parallel"),
            vmem_limit_bytes=48 * 1024 * 1024,
        ),
    )(x, w_arg, b_arg)

    if P_pad != P:
        out = out[:, :, :P]
    return out.reshape(N, 3, H, W)


def _reference(x, weight, bias):
    return jnp.tanh(jnp.einsum("nchw,oc->nohw", x, weight)
                    + bias.reshape(1, 3, 1, 1))


if __name__ == "__main__":
    key = jax.random.PRNGKey(0)
    k_x, k_w, k_b, k2_x, k2_w, k2_b = jax.random.split(key, 6)

    # --- main test: small C (VPU path), module-consistent shape --------------
    N, C, H, W = 2, 4, 16, 16
    x = jax.random.normal(k_x, (N, C, H, W), dtype=jnp.float32)
    bound = 1.0 / jnp.sqrt(float(C))  # PyTorch-style uniform init bound
    weight = jax.random.uniform(k_w, (3, C), minval=-bound, maxval=bound,
                                dtype=jnp.float32)
    bias = jax.random.uniform(k_b, (3,), minval=-bound, maxval=bound,
                              dtype=jnp.float32)

    out = jax.block_until_ready(to_rgb_forward(x, weight, bias))
    ref = _reference(x, weight, bias)
    assert out.shape == (N, 3, H, W)
    assert jnp.allclose(out, ref, atol=1e-5, rtol=1e-5)

    # --- second test: large C (MXU path) + pixel count not a multiple of 128
    #     (exercises the padding / remainder handling). -----------------------
    N2, C2, H2, W2 = 1, 64, 15, 15
    x2 = jax.random.normal(k2_x, (N2, C2, H2, W2), dtype=jnp.float32)
    bound2 = 1.0 / jnp.sqrt(float(C2))
    weight2 = jax.random.uniform(k2_w, (3, C2), minval=-bound2, maxval=bound2,
                                 dtype=jnp.float32)
    bias2 = jax.random.uniform(k2_b, (3,), minval=-bound2, maxval=bound2,
                               dtype=jnp.float32)

    out2 = jax.block_until_ready(to_rgb_forward(x2, weight2, bias2))
    ref2 = _reference(x2, weight2, bias2)
    assert out2.shape == (N2, 3, H2, W2)
    # Looser tolerance: MXU f32 matmul may use reduced internal precision.
    assert jnp.allclose(out2, ref2, atol=2e-2, rtol=2e-2)

    print("KERNEL_OK")
</pallas_src>

<mosaic_0001>
module attributes {stable_mosaic.version = 11 : i64} {
  func.func @_torgb_kernel_small_c(%arg0: i32, %arg1: i32, %arg2: memref<1x4x256xf32, #tpu.memory_space<vmem>>, %arg3: memref<3x4xf32, #tpu.memory_space<smem>>, %arg4: memref<3xf32, #tpu.memory_space<smem>>, %arg5: memref<1x3x256xf32, #tpu.memory_space<vmem>>) attributes {dimension_semantics = [#tpu.dimension_semantics<parallel>, #tpu.dimension_semantics<parallel>], iteration_bounds = array<i64: 2, 1>, scalar_prefetch = 0 : i64, scratch_operands = 0 : i64, tpu.core_type = #tpu.core_type<tc>, window_params = [{transform_indices = @transform_0, window_bounds = array<i64: 1, 4, 256>}, {transform_indices = @transform_1, window_bounds = array<i64: 3, 4>}, {transform_indices = @transform_2, window_bounds = array<i64: 3>}, {transform_indices = @transform_3, window_bounds = array<i64: 1, 3, 256>}]} {
    %c0 = arith.constant 0 : index
    %c0_0 = arith.constant 0 : index
    %c0_1 = arith.constant 0 : index
    %0 = vector.load %arg2[%c0, %c0_0, %c0_1] : memref<1x4x256xf32, #tpu.memory_space<vmem>>, vector<1x4x256xf32>
    %1 = vector.shape_cast %0 : vector<1x4x256xf32> to vector<4x256xf32>
    %c0_2 = arith.constant 0 : index
    %c0_3 = arith.constant 0 : index
    %2 = memref.load %arg3[%c0_2, %c0_3] : memref<3x4xf32, #tpu.memory_space<smem>>
    %3 = vector.extract_strided_slice %1 {offsets = [0, 0], sizes = [1, 256], strides = [1, 1]} : vector<4x256xf32> to vector<1x256xf32>
    %4 = vector.broadcast %2 : f32 to vector<1x256xf32>
    %5 = arith.mulf %4, %3 : vector<1x256xf32>
    %c0_4 = arith.constant 0 : index
    %c1 = arith.constant 1 : index
    %6 = memref.load %arg3[%c0_4, %c1] : memref<3x4xf32, #tpu.memory_space<smem>>
    %7 = vector.extract_strided_slice %1 {offsets = [1, 0], sizes = [1, 256], strides = [1, 1]} : vector<4x256xf32> to vector<1x256xf32>
    %8 = vector.broadcast %6 : f32 to vector<1x256xf32>
    %9 = arith.mulf %8, %7 : vector<1x256xf32>
    %10 = arith.addf %5, %9 : vector<1x256xf32>
    %c0_5 = arith.constant 0 : index
    %c2 = arith.constant 2 : index
    %11 = memref.load %arg3[%c0_5, %c2] : memref<3x4xf32, #tpu.memory_space<smem>>
    %12 = vector.extract_strided_slice %1 {offsets = [2, 0], sizes = [1, 256], strides = [1, 1]} : vector<4x256xf32> to vector<1x256xf32>
    %13 = vector.broadcast %11 : f32 to vector<1x256xf32>
    %14 = arith.mulf %13, %12 : vector<1x256xf32>
    %15 = arith.addf %10, %14 : vector<1x256xf32>
    %c0_6 = arith.constant 0 : index
    %c3 = arith.constant 3 : index
    %16 = memref.load %arg3[%c0_6, %c3] : memref<3x4xf32, #tpu.memory_space<smem>>
    %17 = vector.extract_strided_slice %1 {offsets = [3, 0], sizes = [1, 256], strides = [1, 1]} : vector<4x256xf32> to vector<1x256xf32>
    %18 = vector.broadcast %16 : f32 to vector<1x256xf32>
    %19 = arith.mulf %18, %17 : vector<1x256xf32>
    %20 = arith.addf %15, %19 : vector<1x256xf32>
    %c0_7 = arith.constant 0 : index
    %21 = memref.load %arg4[%c0_7] : memref<3xf32, #tpu.memory_space<smem>>
    %22 = vector.broadcast %21 : f32 to vector<1x256xf32>
    %23 = arith.addf %20, %22 : vector<1x256xf32>
    %24 = math.tanh %23 : vector<1x256xf32>
    %c1_8 = arith.constant 1 : index
    %c0_9 = arith.constant 0 : index
    %25 = memref.load %arg3[%c1_8, %c0_9] : memref<3x4xf32, #tpu.memory_space<smem>>
    %26 = vector.extract_strided_slice %1 {offsets = [0, 0], sizes = [1, 256], strides = [1, 1]} : vector<4x256xf32> to vector<1x256xf32>
    %27 = vector.broadcast %25 : f32 to vector<1x256xf32>
    %28 = arith.mulf %27, %26 : vector<1x256xf32>
    %c1_10 = arith.constant 1 : index
    %c1_11 = arith.constant 1 : index
    %29 = memref.load %arg3[%c1_10, %c1_11] : memref<3x4xf32, #tpu.memory_space<smem>>
    %30 = vector.extract_strided_slice %1 {offsets = [1, 0], sizes = [1, 256], strides = [1, 1]} : vector<4x256xf32> to vector<1x256xf32>
    %31 = vector.broadcast %29 : f32 to vector<1x256xf32>
    %32 = arith.mulf %31, %30 : vector<1x256xf32>
    %33 = arith.addf %28, %32 : vector<1x256xf32>
    %c1_12 = arith.constant 1 : index
    %c2_13 = arith.constant 2 : index
    %34 = memref.load %arg3[%c1_12, %c2_13] : memref<3x4xf32, #tpu.memory_space<smem>>
    %35 = vector.extract_strided_slice %1 {offsets = [2, 0], sizes = [1, 256], strides = [1, 1]} : vector<4x256xf32> to vector<1x256xf32>
    %36 = vector.broadcast %34 : f32 to vector<1x256xf32>
    %37 = arith.mulf %36, %35 : vector<1x256xf32>
    %38 = arith.addf %33, %37 : vector<1x256xf32>
    %c1_14 = arith.constant 1 : index
    %c3_15 = arith.constant 3 : index
    %39 = memref.load %arg3[%c1_14, %c3_15] : memref<3x4xf32, #tpu.memory_space<smem>>
    %40 = vector.extract_strided_slice %1 {offsets = [3, 0], sizes = [1, 256], strides = [1, 1]} : vector<4x256xf32> to vector<1x256xf32>
    %41 = vector.broadcast %39 : f32 to vector<1x256xf32>
    %42 = arith.mulf %41, %40 : vector<1x256xf32>
    %43 = arith.addf %38, %42 : vector<1x256xf32>
    %c1_16 = arith.constant 1 : index
    %44 = memref.load %arg4[%c1_16] : memref<3xf32, #tpu.memory_space<smem>>
    %45 = vector.broadcast %44 : f32 to vector<1x256xf32>
    %46 = arith.addf %43, %45 : vector<1x256xf32>
    %47 = math.tanh %46 : vector<1x256xf32>
    %c2_17 = arith.constant 2 : index
    %c0_18 = arith.constant 0 : index
    %48 = memref.load %arg3[%c2_17, %c0_18] : memref<3x4xf32, #tpu.memory_space<smem>>
    %49 = vector.extract_strided_slice %1 {offsets = [0, 0], sizes = [1, 256], strides = [1, 1]} : vector<4x256xf32> to vector<1x256xf32>
    %50 = vector.broadcast %48 : f32 to vector<1x256xf32>
    %51 = arith.mulf %50, %49 : vector<1x256xf32>
    %c2_19 = arith.constant 2 : index
    %c1_20 = arith.constant 1 : index
    %52 = memref.load %arg3[%c2_19, %c1_20] : memref<3x4xf32, #tpu.memory_space<smem>>
    %53 = vector.extract_strided_slice %1 {offsets = [1, 0], sizes = [1, 256], strides = [1, 1]} : vector<4x256xf32> to vector<1x256xf32>
    %54 = vector.broadcast %52 : f32 to vector<1x256xf32>
    %55 = arith.mulf %54, %53 : vector<1x256xf32>
    %56 = arith.addf %51, %55 : vector<1x256xf32>
    %c2_21 = arith.constant 2 : index
    %c2_22 = arith.constant 2 : index
    %57 = memref.load %arg3[%c2_21, %c2_22] : memref<3x4xf32, #tpu.memory_space<smem>>
    %58 = vector.extract_strided_slice %1 {offsets = [2, 0], sizes = [1, 256], strides = [1, 1]} : vector<4x256xf32> to vector<1x256xf32>
    %59 = vector.broadcast %57 : f32 to vector<1x256xf32>
    %60 = arith.mulf %59, %58 : vector<1x256xf32>
    %61 = arith.addf %56, %60 : vector<1x256xf32>
    %c2_23 = arith.constant 2 : index
    %c3_24 = arith.constant 3 : index
    %62 = memref.load %arg3[%c2_23, %c3_24] : memref<3x4xf32, #tpu.memory_space<smem>>
    %63 = vector.extract_strided_slice %1 {offsets = [3, 0], sizes = [1, 256], strides = [1, 1]} : vector<4x256xf32> to vector<1x256xf32>
    %64 = vector.broadcast %62 : f32 to vector<1x256xf32>
    %65 = arith.mulf %64, %63 : vector<1x256xf32>
    %66 = arith.addf %61, %65 : vector<1x256xf32>
    %c2_25 = arith.constant 2 : index
    %67 = memref.load %arg4[%c2_25] : memref<3xf32, #tpu.memory_space<smem>>
    %68 = vector.broadcast %67 : f32 to vector<1x256xf32>
    %69 = arith.addf %66, %68 : vector<1x256xf32>
    %70 = math.tanh %69 : vector<1x256xf32>
    %71 = tpu.concatenate %24, %47, %70 in 0 : vector<1x256xf32>, vector<1x256xf32>, vector<1x256xf32> -> vector<3x256xf32>
    %c0_26 = arith.constant 0 : index
    %c0_27 = arith.constant 0 : index
    %c0_28 = arith.constant 0 : index
    %72 = vector.load %arg5[%c0_26, %c0_27, %c0_28] : memref<1x3x256xf32, #tpu.memory_space<vmem>>, vector<1x3x256xf32>
    %73 = vector.shape_cast %72 : vector<1x3x256xf32> to vector<3x256xf32>
    %74 = vector.shape_cast %71 : vector<3x256xf32> to vector<1x3x256xf32>
    tpu.vector_store %arg5[%c0_26, %c0_27, %c0_28], %74 {strides = array<i32>} : memref<1x3x256xf32, #tpu.memory_space<vmem>>, vector<1x3x256xf32>,
    return
  }
  func.func @transform_0(%arg0: i32, %arg1: i32) -> (i32, i32, i32) {
    %c0_i32 = arith.constant 0 : i32
    %c0_i32_0 = arith.constant 0 : i32
    return %arg0, %c0_i32, %arg1 : i32, i32, i32
  }
  func.func @transform_1(%arg0: i32, %arg1: i32) -> (i32, i32) {
    %c0_i32 = arith.constant 0 : i32
    %c0_i32_0 = arith.constant 0 : i32
    %c0_i32_1 = arith.constant 0 : i32
    return %c0_i32, %c0_i32_0 : i32, i32
  }
  func.func @transform_2(%arg0: i32, %arg1: i32) -> i32 {
    %c0_i32 = arith.constant 0 : i32
    %c0_i32_0 = arith.constant 0 : i32
    return %c0_i32 : i32
  }
  func.func @transform_3(%arg0: i32, %arg1: i32) -> (i32, i32, i32) {
    %c0_i32 = arith.constant 0 : i32
    %c0_i32_0 = arith.constant 0 : i32
    return %arg0, %c0_i32, %arg1 : i32, i32, i32
  }
}

</mosaic_0001>

<bundles_post_ra>
// kernel: to_rgb_forward.1
= control target key start
LH: loop header
LB: loop body
LE: loop exit
PB: predicated region body
PF: predicated region fallthrough
CT: control target
= control target key end

     0   :  { %8 = vsyncpa [#allocation3], 0  ;;  %s713_s0 = inlined_call_operand.vmem [shape: f32[2,4,256], index: 0, kind: input, shape index: {}]   ;;  %s714_s1 = inlined_call_operand.vmem [shape: f32[3,4], index: 1, kind: input, shape index: {}]   ;;  %s715_s2 = inlined_call_operand.vmem [shape: f32[3], index: 2, kind: input, shape index: {}]   ;;  %s716_s3 = inlined_call_operand.vmem [shape: f32[2,3,256], index: 3, kind: output, shape index: {}]  }
   0x1   :  { %9 = vsyncpa [#allocation5], 0  ;;  %s642_s12 = smov 0   ;;  %s644_s13 = smov 0  }
   0x2   :  { %s646_s14 = smov 0  }
   0x3 LB: > { %s468_s15 = sadd.s32 4294967295, %s618_s14   ;;  %s27_s16 = sadd.s32 1, %s614_s13  ;;  %s618_s14 = sphi %s646_s14, %s15_s14   ;;  %s614_s13 = sphi %s644_s13, %s719_s13   ;;  %s610_s12 = sphi %s642_s12, %s718_s12  }
   0x4   : > { %p29_p0 = scmp.ge.s32.totalorder %s27_s16, 2  ;;  %p470_p1 = scmp.ge.s32.totalorder %s618_s14, 1 }
   0x5   : > { %p130_p2 = scmp.lt.s32.totalorder %s618_s14, 3  ;;  %p663_p4 = scmp.eq.s32.totalorder %s468_s15, 0 }
   0x6   : > { %s721_s16 = smov (%p29_p0, %s27_s16), 0  ;;  %s142_s20 = sshll.u32 %s714_s1, 4  ;;  %s143_s20 = int_to_ptr.vmem [resolvable:$true] %s142_s20 }
   0x7   : > { %p131_p3 = pnand %p470_p1, %p130_p2  ;;  %s152_s23 = sshll.u32 %s715_s2, 4  ;;  %s153_s23 = int_to_ptr.vmem [resolvable:$true] %s152_s23 }
   0x8   : > { %s620_s24 = smov [#allocation2]   ;;  %s621_s25 = smov [#allocation4]  }
   0x9   : > { %p515_p5 = pneg %p131_p3 }
   0xa   : > { %178 = sbr.rel (%p131_p3) target bundleno = 64 (0x40), region = 32 }
   0xb   : > { %p516_p6 = pnand %p663_p4, %p515_p5 }
   0xd   : > { %518 = dma.vmem_to_smem (!%p516_p6), %s143_s20, 64, %s620_s24, [#allocation3]  }
   0xe   : > { %521 = dma.vmem_to_smem (!%p516_p6), %s153_s23, 16, %s621_s25, [#allocation5]  }
   0xf   : > { %601 = dma.done.wait (%p663_p4), [#allocation3], 64  }
  0x10   : > { %603 = vsyncadd (%p663_p4), [#allocation3], 4294967232 }
  0x11   : > { %605 = dma.done.wait (%p663_p4), [#allocation5], 16  }
  0x12   : > { %607 = vsyncadd (%p663_p4), [#allocation5], 4294967280 }
  0x13   : > { %190 = sfence }
  0x14   : > { %p218_p7 = scmp.lt.s32.totalorder %s610_s12, 1  ;;  %s238_s26 = sld [smem:[#allocation2]]  ;;  %vm346_vm0 = vcmask 1040384   ;;  %vm349_vm1 = vcmask 1041408   ;;  %vm355_vm2 = vcmask 1043456  }
  0x15   : > { %s481_s27 = sld [smem:[#allocation2 + $0x1]] }
  0x16   : > { %s723_s12 = smov (!%p218_p7, %s610_s12), 1  ;;  %s483_s28 = sld [smem:[#allocation2 + $0x2]] }
  0x17   : > { %s505_s29 = sshll.u32 %s723_s12, 3  ;;  %s485_s30 = sld [smem:[#allocation2 + $0x3]] }
  0x18   : > { %s225_s6 = scalar_lea.vmem %s713_s0, %s505_s29  ;;  %s693_s7 = sld [smem:[#allocation4]] }
  0x19   : > { %v237_v0 = vld [vmem:[%s225_s6] sm:$0xff]  ;;  %s487_s8 = sld [smem:[#allocation2 + $0x80]]  ;;  %s235_s24 = scalar_lea.vmem %s716_s3, %s505_s29 }
  0x1a   : > { %v239_v1 = vstv %s238_s26  ;;  %s488_s9 = sld [smem:[#allocation2 + $0x81]] }
  0x1b   : > { %v242_v2 = vstv %s481_s27  ;;  %v240_v3 = vmul.f32 %v239_v1, %v237_v0  ;;  %s490_s10 = sld [smem:[#allocation2 + $0x82]] }
  0x1c   : > { %v243_v4 = vmul.f32 %v242_v2, %v237_v0  ;;  %v250_v5 = vstv %s483_s28  ;;  %s492_s11 = sld [smem:[#allocation2 + $0x83]] }
  0x1d   : > { %v251_v7 = vmul.f32 %v250_v5, %v237_v0  ;;  %v258_v8 = vstv %s485_s30  ;;  %s695_s15 = sld [smem:[#allocation4 + $0x1]] }
  0x1e   : > { %v482_v6 = vrot.slane %v243_v4, 9  ;;  %v259_v9 = vmul.f32 %v258_v8, %v237_v0  ;;  %s495_s17 = sld [smem:[#allocation2 + $0x100]]  ;;  %v266_v24 = vstv %s693_s7 }
  0x1f   : > { %v484_v11 = vrot.slane %v251_v7, 10  ;;  %v270_v13 = vstv %s487_s8  ;;  %s496_s18 = sld [smem:[#allocation2 + $0x101]] }
  0x20   : > { %v248_v10 = vadd.f32 %v482_v6, %v240_v3  ;;  %v486_v12 = vrot.slane %v259_v9, 11  ;;  %v273_v15 = vstv %s488_s9  ;;  %s498_s19 = sld [smem:[#allocation2 + $0x102]]  ;;  %v271_v16 = vmul.f32 %v270_v13, %v237_v0 }
  0x21   : > { %v274_v17 = vmul.f32 %v273_v15, %v237_v0  ;;  %v281_v18 = vstv %s490_s10  ;;  %s500_s20 = sld [smem:[#allocation2 + $0x103]] }
  0x22   : > { %v256_v14 = vadd.f32 %v484_v11, %v248_v10  ;;  %v282_v19 = vmul.f32 %v281_v18, %v237_v0  ;;  %v289_v20 = vstv %s492_s11  ;;  %s502_s21 = sld [smem:[#allocation4 + $0x2]] }
  0x23   : > { %v489_v22 = vrot.slane %v274_v17, 9  ;;  %v290_v23 = vmul.f32 %v289_v20, %v237_v0  ;;  %v297_v37 = vstv %s695_s15 }
  0x24   : > { %v264_v21 = vadd.f32 %v486_v12, %v256_v14  ;;  %v491_v25 = vrot.slane %v282_v19, 10  ;;  %v301_v26 = vstv %s495_s17 }
  0x25   : > { %v279_v27 = vadd.f32 %v489_v22, %v271_v16  ;;  %v493_v28 = vrot.slane %v290_v23, 11  ;;  %v304_v29 = vstv %s496_s18  ;;  %v302_v30 = vmul.f32 %v301_v26, %v237_v0 }
  0x26   : > { %v305_v31 = vmul.f32 %v304_v29, %v237_v0  ;;  %v312_v32 = vstv %s498_s19  ;;  %v267_v33 = vadd.f32 %v266_v24, %v264_v21 }
  0x27   : > { %v287_v34 = vadd.f32 %v491_v25, %v279_v27  ;;  %v313_v35 = vmul.f32 %v312_v32, %v237_v0  ;;  %v320_v36 = vstv %s500_s20 }
  0x28   : > { %v497_v38 = vrot.slane %v305_v31, 9  ;;  %v321_v39 = vmul.f32 %v320_v36, %v237_v0  ;;  %552 = vtanh.f32 %v267_v33  ;;  %v328_v46 = vstv %s502_s21 }
  0x29   : > { %v295_v40 = vadd.f32 %v493_v28, %v287_v34  ;;  %v499_v41 = vrot.slane %v313_v35, 10 }
  0x2a   : > { %v310_v42 = vadd.f32 %v497_v38, %v302_v30  ;;  %v501_v43 = vrot.slane %v321_v39, 11 }
  0x2b   : > { %v298_v44 = vadd.f32 %v297_v37, %v295_v40 }
  0x2c   : > { %v318_v45 = vadd.f32 %v499_v41, %v310_v42 }
  0x2d   : > { %554 = vtanh.f32 %v298_v44 }
  0x2e   : > { %v326_v47 = vadd.f32 %v501_v43, %v318_v45  ;;  %v553_v49 = vpop.eup %552 }
  0x2f   : > { %v332_v51 = vperm.slane %v553_v49, 0  ;;  %v333_v52 = vperm.slane %v553_v49, 4 }
  0x30   : > { %v329_v48 = vadd.f32 %v328_v46, %v326_v47 }
  0x32   : > { %556 = vtanh.f32 %v329_v48 }
  0x33   : > { %v555_v50 = vpop.eup %554 }
  0x34   : > { %v337_v53 = vperm.slane %v555_v50, 0  ;;  %v338_v54 = vperm.slane %v555_v50, 4 }
  0x36   : > { %v347_v56 = vsel %vm346_vm0, %v332_v51, %v337_v53  ;;  %v348_v57 = vsel %vm346_vm0, %v333_v52, %v338_v54 }
  0x38   : > { %v557_v55 = vpop.eup %556 }
  0x39   : > { %v342_v58 = vperm.slane %v557_v55, 0  ;;  %v343_v59 = vperm.slane %v557_v55, 4 }
  0x3b   : > { %v350_v60 = vsel %vm349_vm1, %v347_v56, %v342_v58  ;;  %v351_v61 = vsel %vm349_vm1, %v348_v57, %v343_v59 }
  0x3c   : > { %v354_v62 = vrot.slane %v351_v61, 4 }
  0x3e   : > { %v356_v63 = vsel %vm355_vm2, %v350_v60, %v354_v62 }
  0x3f   : > { %358 = vst [vmem:[%s235_s24] sm:$0x77] %v356_v63 }
  0x40 PF: > { %s15_s14 = sadd.s32 1, %s618_s14   ;;  %s718_s12 = smov %s614_s13 }
  0x41   : > { %p12_p8 = scmp.ge.s32.totalorder %s15_s14, 4   ;;  %s719_s13 = smov %s721_s16 }
  0x43   :  { %14 = sbr.rel (!%p12_p8) target bundleno = 3 (0x3), region = 71 }
  0x48   :  { %389 = vsyncpa [#allocation3], 1 }
  0x49   :  { %391 = vsyncpa [#allocation3 + $0x1], 1 }
  0x4a   :  { %392 = vsyncpa [#allocation5], 1 }

</bundles_post_ra>
